<compile_context>
chip_gen: v6e
topology: v6e:2x2x1
jax: 0.10.0
libtpu: 0.0.40
codegen_flags: <defaults>
</compile_context>

<pallas_src>
import functools

import jax
import jax.numpy as jnp
from jax.experimental import pallas as pl
from jax.experimental.pallas import tpu as pltpu


def _round_up(x, m):
    return ((x + m - 1) // m) * m


def _conv_stats_kernel(xw_ref, w_ref, b_ref, y_ref, stats_ref, *,
                       ksize, stride, t_tile, t_out_valid, compute_dtype):
    # xw_ref   : (1, 1, stride*nIn, q_win)  de-interleaved input window
    # w_ref    : (nOut, K*nIn)              fused conv weight
    # b_ref    : (nOut, 1)
    # y_ref    : (1, nOut, t_tile)          conv + bias output tile (f32)
    # stats_ref: (1, 2, 128)                per-batch [sum, sumsq] accumulator
    j = pl.program_id(1)
    n_in = xw_ref.shape[2] // stride

    # Build the (K*nIn, t_tile) im2col slab from contiguous ref slices
    # (tap k -> phase p = k % stride, offset q0 = k // stride).
    pieces = []
    for k in range(ksize):
        p = k % stride
        q0 = k // stride
        pieces.append(xw_ref[0, 0, p * n_in:(p + 1) * n_in, q0:q0 + t_tile])
    slab = jnp.concatenate(pieces, axis=0)

    w = w_ref[...]
    if compute_dtype is not None:
        slab = slab.astype(compute_dtype)
        w = w.astype(compute_dtype)

    # Single fused matmul over the K*nIn contraction (f32 accumulation).
    y = jnp.dot(w, slab, preferred_element_type=jnp.float32)
    y = y + b_ref[...].astype(jnp.float32)                    # (nOut, t_tile)
    y_ref[0] = y.astype(y_ref.dtype)

    # One-pass GlobLN statistics, masked to the valid output columns.
    col = jax.lax.broadcasted_iota(jnp.int32, (1, t_tile), 1) + j * t_tile
    ym = jnp.where(col < t_out_valid, y, 0.0)
    ssum = jnp.sum(ym)
    ssq = jnp.sum(ym * ym)

    @pl.when(j == 0)
    def _():
        stats_ref[...] = jnp.zeros_like(stats_ref)

    upd = jnp.concatenate(
        [jnp.full((1, 128), ssum, dtype=jnp.float32),
         jnp.full((1, 128), ssq, dtype=jnp.float32)], axis=0)
    stats_ref[0] = stats_ref[0] + upd


def _norm_kernel(mean_ref, rstd_ref, y_ref, g_ref, be_ref, o_ref):
    # mean_ref / rstd_ref : (B,) f32 scalar-prefetch refs in SMEM
    b = pl.program_id(0)
    m = mean_ref[b]
    r = rstd_ref[b]
    y = y_ref[0]                                               # (nOut, t_tile)
    o_ref[0] = (g_ref[...] * ((y - m) * r) + be_ref[...]).astype(o_ref.dtype)


def conv_norm(x, weight, bias, gamma, beta, *, ksize, stride=1,
              t_tile=512, compute_dtype=None):
    """x: [B,nIn,T]; weight: torch-style [nOut,nIn,K]; bias/gamma/beta: [nOut]."""
    b, n_in, t = x.shape
    n_out = weight.shape[0]
    pad = (ksize - 1) // 2
    t_out = (t + 2 * pad - ksize) // stride + 1

    # Lane-dense time tile: multiple of 128, capped to the problem size.
    t_tile = max(128, min(_round_up(t_tile, 128), _round_up(t_out, 128)))
    n_t = pl.cdiv(t_out, t_tile)
    t_out_pad = n_t * t_tile

    # --- glue: de-interleaved, windowed input -------------------------------
    # x_win[b, j, p*nIn + c, q] = x_padded[b, c, (j*t_tile + q)*stride + p]
    # so every conv tap inside the kernel is a contiguous lane slice.
    # TODO(synk): the halo / zero-padding is still materialized in HBM here;
    # an in-kernel halo (manual DMA) would save one HBM round trip of x.
    q_win = t_tile + (ksize - 1) // stride
    total_in = (n_t * t_tile + (ksize - 1) // stride) * stride
    right_pad = max(0, total_in - t - pad)
    x_p = jnp.pad(x, ((0, 0), (0, 0), (pad, right_pad)))
    idx = ((jnp.arange(n_t)[:, None, None] * t_tile
            + jnp.arange(q_win)[None, None, :]) * stride
           + jnp.arange(stride)[None, :, None])                # (n_t, stride, q_win)
    x_win = x_p[:, :, idx]                                     # (B, nIn, n_t, stride, q_win)
    x_win = jnp.transpose(x_win, (0, 2, 3, 1, 4)).reshape(
        b, n_t, stride * n_in, q_win)

    # Fused conv weight: (nOut, K*nIn), column order k*nIn + c.
    w2 = jnp.transpose(weight, (0, 2, 1)).reshape(n_out, ksize * n_in)
    b2 = bias.reshape(n_out, 1).astype(jnp.float32)
    g2 = gamma.reshape(n_out, 1).astype(jnp.float32)
    be2 = beta.reshape(n_out, 1).astype(jnp.float32)

    conv_kernel = functools.partial(
        _conv_stats_kernel, ksize=ksize, stride=stride, t_tile=t_tile,
        t_out_valid=t_out, compute_dtype=compute_dtype)

    flops = 2 * b * n_out * ksize * n_in * t_out
    bytes_accessed = (x_win.size * x_win.dtype.itemsize
                      + w2.size * w2.dtype.itemsize
                      + 2 * b * n_out * t_out_pad * 4)

    # Pass 1: conv + bias (tiled over time) + per-batch sum / sumsq.
    y, stats = pl.pallas_call(
        conv_kernel,
        out_shape=(jax.ShapeDtypeStruct((b, n_out, t_out_pad), jnp.float32),
                   jax.ShapeDtypeStruct((b, 2, 128), jnp.float32)),
        grid_spec=pltpu.PrefetchScalarGridSpec(
            num_scalar_prefetch=0,
            grid=(b, n_t),
            in_specs=[
                pl.BlockSpec((1, 1, stride * n_in, q_win),
                             lambda i, j: (i, j, 0, 0)),
                pl.BlockSpec((n_out, ksize * n_in), lambda i, j: (0, 0)),
                pl.BlockSpec((n_out, 1), lambda i, j: (0, 0)),
            ],
            out_specs=[
                pl.BlockSpec((1, n_out, t_tile), lambda i, j: (i, 0, j)),
                pl.BlockSpec((1, 2, 128), lambda i, j: (i, 0, 0)),
            ],
        ),
        compiler_params=pltpu.CompilerParams(
            dimension_semantics=("parallel", "arbitrary"),
            vmem_limit_bytes=32 * 1024 * 1024),
        cost_estimate=pl.CostEstimate(flops=flops, transcendentals=0,
                                      bytes_accessed=bytes_accessed),
    )(x_win, w2, b2)

    # Tiny per-batch reduction finalization (f32, clamped variance).
    cnt = jnp.float32(n_out * t_out)
    mean = stats[:, 0, 0] / cnt
    var = jnp.maximum(stats[:, 1, 0] / cnt - mean * mean, 0.0)
    rstd = jax.lax.rsqrt(var + 1e-8)

    # Pass 2: normalization + per-channel affine, tiled over time.
    out = pl.pallas_call(
        _norm_kernel,
        out_shape=jax.ShapeDtypeStruct((b, n_out, t_out_pad), x.dtype),
        grid_spec=pltpu.PrefetchScalarGridSpec(
            num_scalar_prefetch=2,
            grid=(b, n_t),
            in_specs=[
                pl.BlockSpec((1, n_out, t_tile),
                             lambda i, j, mean_r, rstd_r: (i, 0, j)),
                pl.BlockSpec((n_out, 1), lambda i, j, mean_r, rstd_r: (0, 0)),
                pl.BlockSpec((n_out, 1), lambda i, j, mean_r, rstd_r: (0, 0)),
            ],
            out_specs=pl.BlockSpec((1, n_out, t_tile),
                                   lambda i, j, mean_r, rstd_r: (i, 0, j)),
        ),
        compiler_params=pltpu.CompilerParams(
            dimension_semantics=("parallel", "parallel"),
            vmem_limit_bytes=32 * 1024 * 1024),
    )(mean, rstd, y, g2, be2)

    return out[:, :, :t_out]


def _reference(x, weight, bias, gamma, beta, *, ksize, stride=1):
    """Pure-JAX reference matching torch Conv1d + GlobLN."""
    pad = (ksize - 1) // 2
    y = jax.lax.conv_general_dilated(
        x, weight, window_strides=(stride,), padding=[(pad, pad)],
        dimension_numbers=("NCH", "OIH", "NCH"))
    y = y + bias[None, :, None]
    mean = jnp.mean(y, axis=(1, 2), keepdims=True)
    var = jnp.mean((y - mean) ** 2, axis=(1, 2), keepdims=True)
    normed = (y - mean) / jnp.sqrt(var + 1e-8)
    return gamma[None, :, None] * normed + beta[None, :, None]


if __name__ == "__main__":
    B, nIn, nOut, K, T = 2, 4, 6, 3, 16
    stride = 1

    key = jax.random.PRNGKey(0)
    kx, kw, kb = jax.random.split(key, 3)
    x = jax.random.normal(kx, (B, nIn, T), jnp.float32)
    weight = jax.random.normal(kw, (nOut, nIn, K), jnp.float32) * 0.1
    bias = jax.random.normal(kb, (nOut,), jnp.float32) * 0.1
    gamma = jnp.ones((nOut,), jnp.float32)   # GlobLN init
    beta = jnp.zeros((nOut,), jnp.float32)   # GlobLN init

    out = conv_norm(x, weight, bias, gamma, beta, ksize=K, stride=stride)
    out = jax.block_until_ready(out)

    ref = _reference(x, weight, bias, gamma, beta, ksize=K, stride=stride)
    assert out.shape == ref.shape
    assert jnp.allclose(out, ref, rtol=1e-4, atol=1e-4), "mismatch vs reference"
    print("KERNEL_OK")
</pallas_src>

<mosaic_0001>
module attributes {stable_mosaic.version = 11 : i64} {
  func.func @_conv_stats_kernel(%arg0: i32, %arg1: i32, %arg2: memref<1x1x4x130xf32, #tpu.memory_space<vmem>>, %arg3: memref<6x12xf32, #tpu.memory_space<vmem>>, %arg4: memref<6x1xf32, #tpu.memory_space<vmem>>, %arg5: memref<1x6x128xf32, #tpu.memory_space<vmem>>, %arg6: memref<1x2x128xf32, #tpu.memory_space<vmem>>) attributes {dimension_semantics = [#tpu.dimension_semantics<parallel>, #tpu.dimension_semantics<arbitrary>], iteration_bounds = array<i64: 2, 1>, scalar_prefetch = 0 : i64, scratch_operands = 0 : i64, tpu.core_type = #tpu.core_type<tc>, window_params = [{transform_indices = @transform_0, window_bounds = array<i64: 1, 1, 4, 130>}, {pipeline_mode = #tpu.pipeline_mode<synchronous>, transform_indices = @transform_1, window_bounds = array<i64: 6, 12>}, {pipeline_mode = #tpu.pipeline_mode<synchronous>, transform_indices = @transform_2, window_bounds = array<i64: 6, 1>}, {transform_indices = @transform_3, window_bounds = array<i64: 1, 6, 128>}, {transform_indices = @transform_4, window_bounds = array<i64: 1, 2, 128>}]} {
    %c0 = arith.constant 0 : index
    %c0_0 = arith.constant 0 : index
    %c0_1 = arith.constant 0 : index
    %c0_2 = arith.constant 0 : index
    %0 = vector.load %arg2[%c0, %c0_0, %c0_1, %c0_2] : memref<1x1x4x130xf32, #tpu.memory_space<vmem>>, vector<1x1x4x128xf32>
    %1 = vector.shape_cast %0 : vector<1x1x4x128xf32> to vector<4x128xf32>
    %c0_3 = arith.constant 0 : index
    %c0_4 = arith.constant 0 : index
    %c0_5 = arith.constant 0 : index
    %c1 = arith.constant 1 : index
    %2 = vector.load %arg2[%c0_3, %c0_4, %c0_5, %c1] : memref<1x1x4x130xf32, #tpu.memory_space<vmem>>, vector<1x1x4x128xf32>
    %3 = vector.shape_cast %2 : vector<1x1x4x128xf32> to vector<4x128xf32>
    %c0_6 = arith.constant 0 : index
    %c0_7 = arith.constant 0 : index
    %c0_8 = arith.constant 0 : index
    %c2 = arith.constant 2 : index
    %4 = vector.load %arg2[%c0_6, %c0_7, %c0_8, %c2] : memref<1x1x4x130xf32, #tpu.memory_space<vmem>>, vector<1x1x4x128xf32>
    %5 = vector.shape_cast %4 : vector<1x1x4x128xf32> to vector<4x128xf32>
    %6 = tpu.concatenate %1, %3, %5 in 0 : vector<4x128xf32>, vector<4x128xf32>, vector<4x128xf32> -> vector<12x128xf32>
    %c0_9 = arith.constant 0 : index
    %c0_10 = arith.constant 0 : index
    %7 = vector.load %arg3[%c0_9, %c0_10] : memref<6x12xf32, #tpu.memory_space<vmem>>, vector<6x12xf32>
    %cst = arith.constant dense<0.000000e+00> : vector<6x128xf32>
    %8 = tpu.matmul %7, %6, %cst {dimension_numbers = #tpu.dot_dimension_numbers<[1], [0], [0], [1], [0, 0, 1, 1], [], []>} : vector<6x12xf32>, vector<12x128xf32>, vector<6x128xf32> -> vector<6x128xf32>
    %c0_11 = arith.constant 0 : index
    %c0_12 = arith.constant 0 : index
    %9 = vector.load %arg4[%c0_11, %c0_12] : memref<6x1xf32, #tpu.memory_space<vmem>>, vector<6x1xf32>
    %10 = vector.broadcast %9 : vector<6x1xf32> to vector<6x128xf32>
    %11 = arith.addf %8, %10 : vector<6x128xf32>
    %c0_13 = arith.constant 0 : index
    %c0_14 = arith.constant 0 : index
    %c0_15 = arith.constant 0 : index
    %12 = vector.load %arg5[%c0_13, %c0_14, %c0_15] : memref<1x6x128xf32, #tpu.memory_space<vmem>>, vector<1x6x128xf32>
    %13 = vector.shape_cast %12 : vector<1x6x128xf32> to vector<6x128xf32>
    %14 = vector.shape_cast %11 : vector<6x128xf32> to vector<1x6x128xf32>
    tpu.vector_store %arg5[%c0_13, %c0_14, %c0_15], %14 {strides = array<i32>} : memref<1x6x128xf32, #tpu.memory_space<vmem>>, vector<1x6x128xf32>,
    %15 = tpu.iota {dimensions = array<i32: 1>} : vector<1x128xi32>
    %c128_i32 = arith.constant 128 : i32
    %16 = arith.muli %arg1, %c128_i32 : i32
    %17 = vector.broadcast %16 : i32 to vector<1x128xi32>
    %18 = arith.addi %15, %17 : vector<1x128xi32>
    %c16_i32 = arith.constant 16 : i32
    %19 = vector.broadcast %c16_i32 : i32 to vector<1x128xi32>
    %20 = arith.cmpi slt, %18, %19 : vector<1x128xi32>
    %cst_16 = arith.constant 0.000000e+00 : f32
    %21 = vector.shape_cast %20 : vector<1x128xi1> to vector<1x128xi1>
    %22 = vector.broadcast %21 : vector<1x128xi1> to vector<6x128xi1>
    %23 = vector.broadcast %cst_16 : f32 to vector<6x128xf32>
    %24 = arith.select %22, %11, %23 : vector<6x128xi1>, vector<6x128xf32>
    %25 = vector.shape_cast %24 : vector<6x128xf32> to vector<1x6x128xf32>
    %cst_17 = arith.constant dense<0.000000e+00> : vector<1xf32>
    %26 = vector.multi_reduction <add>, %25, %cst_17 [1, 2] : vector<1x6x128xf32> to vector<1xf32>
    %27 = vector.shape_cast %26 : vector<1xf32> to vector<1x1x1xf32>
    %28 = vector.extract %27[0, 0, 0] : f32 from vector<1x1x1xf32>
    %29 = arith.mulf %24, %24 : vector<6x128xf32>
    %30 = vector.shape_cast %29 : vector<6x128xf32> to vector<1x6x128xf32>
    %cst_18 = arith.constant dense<0.000000e+00> : vector<1xf32>
    %31 = vector.multi_reduction <add>, %30, %cst_18 [1, 2] : vector<1x6x128xf32> to vector<1xf32>
    %32 = vector.shape_cast %31 : vector<1xf32> to vector<1x1x1xf32>
    %33 = vector.extract %32[0, 0, 0] : f32 from vector<1x1x1xf32>
    %c0_i32 = arith.constant 0 : i32
    %34 = arith.cmpi eq, %arg1, %c0_i32 : i32
    %35 = arith.extui %34 : i1 to i32
    %c0_i32_19 = arith.constant 0 : i32
    %36 = arith.cmpi ne, %35, %c0_i32_19 : i32
    scf.if %36 {
      %cst_26 = arith.constant 0.000000e+00 : f32
      %46 = vector.broadcast %cst_26 : f32 to vector<1x2x128xf32>
      %c0_27 = arith.constant 0 : index
      %c0_28 = arith.constant 0 : index
      %c0_29 = arith.constant 0 : index
      %47 = vector.load %arg6[%c0_27, %c0_28, %c0_29] : memref<1x2x128xf32, #tpu.memory_space<vmem>>, vector<1x2x128xf32>
      tpu.vector_store %arg6[%c0_27, %c0_28, %c0_29], %46 {strides = array<i32>} : memref<1x2x128xf32, #tpu.memory_space<vmem>>, vector<1x2x128xf32>,
    } else {
    }
    %37 = vector.broadcast %28 : f32 to vector<1x128xf32>
    %38 = vector.broadcast %33 : f32 to vector<1x128xf32>
    %39 = tpu.concatenate %37, %38 in 0 : vector<1x128xf32>, vector<1x128xf32> -> vector<2x128xf32>
    %c0_20 = arith.constant 0 : index
    %c0_21 = arith.constant 0 : index
    %c0_22 = arith.constant 0 : index
    %40 = vector.load %arg6[%c0_20, %c0_21, %c0_22] : memref<1x2x128xf32, #tpu.memory_space<vmem>>, vector<1x2x128xf32>
    %41 = vector.shape_cast %40 : vector<1x2x128xf32> to vector<2x128xf32>
    %42 = arith.addf %41, %39 : vector<2x128xf32>
    %c0_23 = arith.constant 0 : index
    %c0_24 = arith.constant 0 : index
    %c0_25 = arith.constant 0 : index
    %43 = vector.load %arg6[%c0_23, %c0_24, %c0_25] : memref<1x2x128xf32, #tpu.memory_space<vmem>>, vector<1x2x128xf32>
    %44 = vector.shape_cast %43 : vector<1x2x128xf32> to vector<2x128xf32>
    %45 = vector.shape_cast %42 : vector<2x128xf32> to vector<1x2x128xf32>
    tpu.vector_store %arg6[%c0_23, %c0_24, %c0_25], %45 {strides = array<i32>} : memref<1x2x128xf32, #tpu.memory_space<vmem>>, vector<1x2x128xf32>,
    return
  }
  func.func @transform_0(%arg0: i32, %arg1: i32) -> (i32, i32, i32, i32) {
    %c0_i32 = arith.constant 0 : i32
    %c0_i32_0 = arith.constant 0 : i32
    %c0_i32_1 = arith.constant 0 : i32
    return %arg0, %arg1, %c0_i32, %c0_i32_0 : i32, i32, i32, i32
  }
  func.func @transform_1(%arg0: i32, %arg1: i32) -> (i32, i32) {
    %c0_i32 = arith.constant 0 : i32
    %c0_i32_0 = arith.constant 0 : i32
    %c0_i32_1 = arith.constant 0 : i32
    return %c0_i32, %c0_i32_0 : i32, i32
  }
  func.func @transform_2(%arg0: i32, %arg1: i32) -> (i32, i32) {
    %c0_i32 = arith.constant 0 : i32
    %c0_i32_0 = arith.constant 0 : i32
    %c0_i32_1 = arith.constant 0 : i32
    return %c0_i32, %c0_i32_0 : i32, i32
  }
  func.func @transform_3(%arg0: i32, %arg1: i32) -> (i32, i32, i32) {
    %c0_i32 = arith.constant 0 : i32
    %c0_i32_0 = arith.constant 0 : i32
    return %arg0, %c0_i32, %arg1 : i32, i32, i32
  }
  func.func @transform_4(%arg0: i32, %arg1: i32) -> (i32, i32, i32) {
    %c0_i32 = arith.constant 0 : i32
    %c0_i32_0 = arith.constant 0 : i32
    %c0_i32_1 = arith.constant 0 : i32
    return %arg0, %c0_i32, %c0_i32_0 : i32, i32, i32
  }
}

</mosaic_0001>

<bundles_post_ra>
// kernel: tpu_custom_call.1
= control target key start
LH: loop header
LB: loop body
LE: loop exit
PB: predicated region body
PF: predicated region fallthrough
CT: control target
= control target key end

     0   :  { %10 = vsyncpa [#allocation3], 0  ;;  %s928_s0 = inlined_call_operand.hbm [shape: f32[2,1,4,130], index: 0, kind: input, shape index: {}]   ;;  %s929_s1 = inlined_call_operand.vmem [shape: f32[6,12], index: 1, kind: input, shape index: {}]   ;;  %s930_s2 = inlined_call_operand.vmem [shape: f32[6,1], index: 2, kind: input, shape index: {}]   ;;  %s931_s3 = inlined_call_operand.vmem [shape: f32[2,6,128], index: 3, kind: output, shape index: {0}]   ;;  %s932_s4 = inlined_call_operand.hbm [shape: f32[2,2,128], index: 4, kind: output, shape index: {1}]  }
   0x1   :  { %12 = vsyncpa [#allocation3 + $0x1], 0 }
   0x2   :  { %13 = vsyncpa [#allocation4], 0 }
   0x3   :  { %15 = vsyncpa [#allocation4 + $0x1], 0  ;;  %s776_s15 = smov 0   ;;  %s778_s16 = smov 0  }
   0x4   :  { %s780_s17 = smov 0   ;;  %s782_s18 = smov 0  }
   0x5   :  { %s784_s19 = smov 0   ;;  %s786_s20 = smov 0  }
   0x6 LB: > { %s532_s21 = sadd.s32 4294967295, %s742_s20   ;;  %s533_s22 = sadd.s32 4294967294, %s742_s20   ;;  %s742_s20 = sphi %s786_s20, %s21_s20   ;;  %s738_s19 = sphi %s784_s19, %s944_s19   ;;  %s734_s18 = sphi %s782_s18, %s943_s18   ;;  %s730_s17 = sphi %s780_s17, %s942_s17   ;;  %s726_s16 = sphi %s778_s16, %s941_s16   ;;  %s722_s15 = sphi %s776_s15, %s940_s15  }
   0x7   : > { %s33_s23 = sadd.s32 1, %s738_s19  ;;  %s42_s24 = sadd.s32 1, %s730_s17 }
   0x8   : > { %p35_p0 = scmp.ge.s32.totalorder %s33_s23, 2  ;;  %p49_p1 = scmp.ne.s32.totalorder %s730_s17, %s726_s16 }
   0x9   : > { %p50_p2 = scmp.eq.s32.totalorder %s742_s20, 0  ;;  %p55_p3 = scmp.ne.s32.totalorder %s726_s16, %s722_s15 }
   0xa   : > { %s946_s23 = smov (%p35_p0, %s33_s23), 0  ;;  %p56_p5 = scmp.eq.s32.totalorder %s532_s21, 0 }
   0xb   : > { %p817_p4 = por %p50_p2, %p49_p1  ;;  %s37_s26 = ssub.s32 %s738_s19, %s946_s23 }
   0xc   : > { %p149_p6 = scmp.eq.s32.totalorder %s532_s21, 1  ;;  %p40_p7 = scmp.eq.s32.totalorder %s37_s26, 0 }
   0xd   : > { %p823_p8 = por %p56_p5, %p55_p3  ;;  %p155_p10 = scmp.eq.s32.totalorder %s533_s22, 1 }
   0xe   : > { %p827_p9 = por %p149_p6, %p49_p1  ;;  %p576_p13 = scmp.lt.s32.totalorder %s742_s20, 2 }
   0xf   : > { %s832_s29 = scalar_select %p40_p7, %s730_s17, %s42_s24  }
  0x10   : > { %p834_p11 = por %p155_p10, %p55_p3  ;;  %s181_s5 = sand.u32 1, %s730_s17  }
  0x11   : > { %s536_s6 = sshll.u32 %s181_s5, 3  ;;  %s549_s7 = sshll.u32 %s738_s19, 7 }
  0x12   : > { %s936_s30 = scalar_select %p834_p11, 1, 0 }
  0x13   : > { %s193_s10 = scalar_lea.hbm %s928_s0, %s549_s7  ;;  %s185_s11 = scalar_lea.vmem [#allocation2], %s536_s6 }
  0x14   : > { %s195_s12 = sshll.u32 %s185_s11, 4  ;;  %p847_p0 = pnand %p576_p13, %p817_p4  ;;  %s196_s12 = int_to_ptr.vmem [resolvable:$true] %s195_s12 }
  0x15   : > { %p539_p1 = scmp.ge.s32.totalorder %s742_s20, 1  ;;  %p200_p2 = scmp.lt.s32.totalorder %s742_s20, 3 }
  0x16   : > { %s182_s14 = scalar_lea.sflag [#allocation3], %s181_s5  ;;  %p636_p3 = pneg %p847_p0 }
  0x17   : > { %s647_s21 = scalar_lea.vmem %s196_s12, 128  ;;  %s744_s22 = smov [#allocation2]  }
  0x18   : > { %p648_p5 = scmp.ne.s32.totalorder %s196_s12, %s647_s21  ;;  %s652_s24 = sshll.u32 %s744_s22, 4  ;;  %s653_s24 = int_to_ptr.vmem [resolvable:$false] %s652_s24 }
  0x19   : > { %s654_s26 = scalar_lea.vmem %s653_s24, 256  ;;  %p655_p10 = scmp.lt.s32.totalorder %s196_s12, %s653_s24 }
  0x1a   : > { %p650_p6 = pnand %p648_p5, %p636_p3  ;;  %p656_p12 = scmp.lt.s32.totalorder %s654_s26, %s647_s21 }
  0x1c   : > { %p651_p7 = pneg %p650_p6  ;;  %p657_p4 = por %p656_p12, %p655_p10 }
  0x1e   : > { %p658_p13 = pnand %p657_p4, %p651_p7 }
  0x20   : > { %661 = shalt.err (!%p658_p13)
}
  0x21   : > { %571 = dma.hbm_to_vmem [thread:$0]  (!%p847_p0), %s193_s10, 128, %s196_s12, %s182_s14  }
  0x22   : > { %p201_p11 = pnand %p539_p1, %p200_p2 }
  0x23   : > { %s862_s25 = sand.u32 (!%p201_p11), 1, %s726_s16  }
  0x24   : > { %204 = sbr.rel (%p201_p11) target bundleno = 584 (0x248), region = 32  ;;  %s540_s5 = sshll.u32 (!%p201_p11), %s862_s25, 3 }
  0x25   : > { %s207_s6 = scalar_lea.sflag (!%p201_p11), [#allocation3], %s862_s25  ;;  %s210_s7 = scalar_lea.vmem (!%p201_p11), [#allocation2], %s540_s5 }
  0x29   : > { %713 = dma.done.wait (%p823_p8), %s207_s6, 128  }
  0x2a   : > { %715 = vsyncadd (%p823_p8), %s207_s6, 4294967168  ;;  %s541_s8 = sshll.u32 %s862_s25, 1  ;;  %v745_v0 = vmov 0.0   ;;  %vm746_vm0 = vmmov 0   ;;  %v747_v1 = vmov 0   ;;  %v250_v2 = vld [vmem:[%s210_s7] sm:$0xff]  ;;  %v353_v15 = vlaneseq }
  0x2b   : > { %553 = vmatprep.subr.mxu0 %v745_v0  ;;  %s871_s9 = scalar_lea.vmem [#allocation5], %s541_s8  ;;  %557 = vmatprep.mubr.msk.f32.mxu0 %vm746_vm0, %v745_v0  ;;  %s748_s10 = smov 126   ;;  %v252_v3 = vcombine.low %v250_v2, %v250_v2  ;;  %v260_v4 = vcombine.high %v250_v2, %v250_v2  ;;  %v270_v5 = vld [vmem:[%s930_s2] sm:$0x3f]  ;;  %vm265_vm1 = vcmask 1031168   ;;  %vm267_vm2 = vcmask 1043456  }
  0x2c   : > { %388 = vst [vmem:[%s871_s9] sm:$0x3] %v745_v0  ;;  %631 = vset.pattern.permute.xlu0 %v747_v1  ;;  %s749_s11 = smov 127   ;;  %vm257_vm3 = vcmask 1039360   ;;  %v249_v10 = vld [vmem:[%s210_s7] sm:$0xf]  ;;  %vm276_vm4 = vcmask 97280  }
  0x2d   : > { %261 = vrot.lane.b32.xlu0 %v250_v2, %s748_s10  ;;  %253 = vrot.lane.b32.xlu1 %v252_v3, %s749_s11  ;;  %v269_v13 = vld [vmem:[%s929_s1] sm:$0x3f]  ;;  %p242_p8 = scmp.lt.s32.totalorder %s734_s18, 1  ;;  %v354_v16 = vand.u32 127, %v353_v15  ;;  %vm362_vm6 = vcmask 1045504   ;;  %vm391_vm7 = vcmask 1040384  }
  0x2e   : > { %s546_s7 = sshll.u32 %s734_s18, 5  ;;  %s404_s13 = scalar_lea.sflag [#allocation4], %s862_s25 }
  0x2f   : > { %s243_s21 = scalar_select %p242_p8, %s734_s18, 1  ;;  %vm358_vm5 = vcmp.lt.s32.totalorder %v354_v16, 16 }
  0x30   : > { %s418_s12 = scalar_lea.hbm %s932_s4, %s546_s7  ;;  %s750_s18 = smov [#allocation5]  }
  0x31   : > { %263 = vrot.lane.b32.xlu0 %v260_v4, %s748_s10  ;;  %255 = vrot.lane.b32.xlu1 %v250_v2, %s749_s11  ;;  %s542_s22 = sshll.u32 %s243_s21, 3  ;;  %s420_s10 = sshll.u32 %s871_s9, 4  ;;  %s421_s10 = int_to_ptr.vmem [resolvable:$true] %s420_s10 }
  0x32   : > { %s248_s5 = scalar_lea.vmem %s931_s3, %s542_s22  ;;  %s662_s14 = scalar_lea.vmem %s421_s10, 32 }
  0x33   : > { %v393_v39 = vld [vmem:[%s871_s9] sm:$0x3]  ;;  %p663_p11 = scmp.ne.s32.totalorder %s421_s10, %s662_s14  ;;  %s666_s21 = sshll.u32 %s750_s18, 4  ;;  %s667_s21 = int_to_ptr.vmem [resolvable:$false] %s666_s21 }
  0x34   : > { %s668_s22 = scalar_lea.vmem %s667_s21, 64  ;;  %p669_p1 = scmp.lt.s32.totalorder %s421_s10, %s667_s21 }
  0x35   : > { %273 = vperm.xlu0 %631, %v270_v5   ;;  %p664_p12 = pnand %p663_p11, %p827_p9  ;;  %p670_p2 = scmp.lt.s32.totalorder %s668_s22, %s662_s14 }
  0x37   : > { %p665_p0 = pneg %p664_p12  ;;  %p671_p3 = por %p670_p2, %p669_p1 }
  0x39   : > { %p672_p5 = pnand %p671_p3, %p665_p0 }
  0x9f   : > { %v262_v6 = vpop.permute.xlu0 %261  ;;  %v254_v7 = vpop.permute.xlu1 %253 }
  0xa3   : > { %v264_v8 = vpop.permute.xlu0 %263  ;;  %v256_v11 = vpop.permute.xlu1 %255 }
  0xa4   : > { %v266_v9 = vsel %vm265_vm1, %v262_v6, %v264_v8  ;;  %v258_v12 = vsel %vm257_vm3, %v254_v7, %v256_v11 }
  0xa5   : > { %554 = vmatpush3.msk.msra.mxu0 %vm267_vm2, %v266_v9  ;;  %v268_v14 = vsel %vm267_vm2, %v249_v10, %v258_v12 }
  0xa6   : > { %555 = vmatprep.subr.mxu0 %v745_v0 }
  0xa7   : > { %556 = vmatpush3.msra.mxu0 %v268_v14 }
  0xa8   : > { %558 = vmatmul.mubr.msk.f32.vlgmr.msra.gmra.mxu0 %vm276_vm4, %v269_v13 }
  0xb0   : > { %v274_v17 = vpop.permute.xlu0 %273 }
 0x168   : > { %v348_v18 = vpop.f32.mrf.mxu0 }
 0x169   : > { %v349_v19 = vadd.f32 %v348_v18, %v274_v17 }
 0x16a   : > { %v559_v20 = vpop.f32.mrf.mxu0 }
 0x16b   : > { %352 = vst [vmem:[%s248_s5] sm:$0x3f] %v349_v19  ;;  %v361_v21 = vsel %vm358_vm5, %v349_v19, 0.0 }
 0x16c   : > { %v363_v22 = vsel %vm362_vm6, %v361_v21, 0.0  ;;  %v373_v23 = vmul.f32 %v361_v21, %v361_v21 }
 0x16d   : > { %364 = vadd.xlane.f32.xlu1 %v363_v22 }
 0x16e   : > { %v374_v24 = vsel %vm362_vm6, %v373_v23, 0.0 }
 0x16f   : > { %375 = vadd.xlane.f32.xlu0 %v374_v24 }
 0x1f6   : > { %v365_v25 = vpop.xlane.xlu1 %364 }
 0x1f7   : > { %v366_v26 = vrot.slane %v365_v25, 4 }
 0x1f8   : > { %v376_v27 = vpop.xlane.xlu0 %375 }
 0x1f9   : > { %v367_v28 = vadd.f32 %v366_v26, %v365_v25  ;;  %v377_v29 = vrot.slane %v376_v27, 4 }
 0x1fb   : > { %v368_v30 = vrot.slane %v367_v28, 2  ;;  %v378_v31 = vadd.f32 %v377_v29, %v376_v27 }
 0x1fd   : > { %v379_v32 = vrot.slane %v378_v31, 2  ;;  %v369_v33 = vadd.f32 %v368_v30, %v367_v28 }
 0x1ff   : > { %v380_v34 = vadd.f32 %v379_v32, %v378_v31  ;;  %v370_v35 = vrot.slane %v369_v33, 1 }
 0x201   : > { %v371_v36 = vadd.f32 %v370_v35, %v369_v33  ;;  %v381_v37 = vrot.slane %v380_v34, 1 }
 0x203   : > { %560 = vpush %v371_v36  ;;  %v382_v38 = vadd.f32 %v381_v37, %v380_v34 }
 0x205   : > { %562 = vpush %v382_v38 }
 0x234   : > { %s561_s6 = spop %560 }
 0x235   : > { %v389_v40 = vstv %s561_s6 }
 0x236   : > { %s563_s8 = spop %562 }
 0x237   : > { %v390_v41 = vstv %s563_s8 }
 0x238   : > { %v392_v42 = vsel %vm391_vm7, %v389_v40, %v390_v41 }
 0x239   : > { %v394_v43 = vadd.f32 %v393_v39, %v392_v42 }
 0x23b   : > { %395 = vst [vmem:[%s871_s9] sm:$0x3] %v394_v43 }
 0x23c   : > { %675 = shalt.err (!%p672_p5)
}
 0x23d   : > { %s676_s24 = scalar_lea.hbm %s418_s12, 32  ;;  %s680_s26 = scalar_lea.hbm %s932_s4, 64 }
 0x23e   : > { %p677_p6 = scmp.ne.s32.totalorder %s418_s12, %s676_s24  ;;  %p681_p4 = scmp.lt.s32.totalorder %s418_s12, %s932_s4 }
 0x23f   : > { %p682_p13 = scmp.lt.s32.totalorder %s680_s26, %s676_s24 }
 0x240   : > { %p678_p7 = pnand %p677_p6, %p827_p9 }
 0x241   : > { %p683_p8 = por %p682_p13, %p681_p4 }
 0x242   : > { %p679_p10 = pneg %p678_p7 }
 0x244   : > { %p684_p11 = pnand %p683_p8, %p679_p10 }
 0x246   : > { %687 = shalt.err (!%p684_p11)
}
 0x247   : > { %566 = dma.vmem_to_hbm [thread:$0]  (%p827_p9), %s421_s10, 32, %s418_s12, %s404_s13  }
 0x248 PF: > { %s442_s7 = sand.u32 1, %s722_s15   ;;  %p938_p12 = scmp.ne.s32.totalorder %s936_s30, 0 }
 0x249   : > { %p939_p0 = scmp.ge.s32.totalorder %s742_s20, 2  ;;  %s443_s8 = scalar_lea.sflag [#allocation4], %s442_s7 }
 0x24b   : > { %p573_p1 = pnand %p939_p0, %p938_p12 }
 0x24d   : > { %p574_p2 = pneg %p573_p1 }
 0x24f   : > { %717 = dma.done.wait (%p574_p2), %s443_s8, 32  }
 0x250   : > { %719 = vsyncadd (%p574_p2), %s443_s8, 4294967264  ;;  %s21_s20 = sadd.s32 1, %s742_s20   ;;  %s940_s15 = smov %s726_s16 }
 0x251   : > { %p18_p3 = scmp.ge.s32.totalorder %s21_s20, 4   ;;  %s941_s16 = smov %s730_s17 }
 0x252   : > { %s942_s17 = smov %s832_s29  ;;  %s943_s18 = smov %s738_s19 }
 0x253   : > { %s944_s19 = smov %s946_s23  ;;  %20 = sbr.rel (!%p18_p3) target bundleno = 6 (0x6), region = 93 }
 0x258   :  { %448 = vsyncpa [#allocation3], 1 }
 0x259   :  { %450 = vsyncpa [#allocation3 + $0x1], 1 }
 0x25a   :  { %451 = vsyncpa [#allocation4], 1 }
 0x25b   :  { %453 = vsyncpa [#allocation4 + $0x1], 1 }

</bundles_post_ra>
